<compile_context>
chip_gen: v7x
topology: tpu7x:2x2x1
jax: 0.10.0
libtpu: 0.0.40
codegen_flags: <defaults>
</compile_context>

<pallas_src>
import jax
import jax.numpy as jnp
from jax.experimental import pallas as pl
from jax.experimental.pallas import tpu as pltpu


# ----------------------------- small helpers ------------------------------- #

def _cdiv(a, b):
    return -(-a // b)


def _round_up(n, m):
    return _cdiv(n, m) * m


def _sublane_align(dtype):
    itemsize = jnp.dtype(dtype).itemsize
    if itemsize >= 4:
        return 8
    if itemsize == 2:
        return 16
    return 32


def _choose_m_tile(b, target, align):
    """cdiv-based M tile: minimal padded rows while keeping Bp % tm == 0."""
    if b <= target:
        return _round_up(b, align)
    nblocks = _cdiv(b, target)
    return _round_up(_cdiv(b, nblocks), align)


# -------------------------------- kernels ---------------------------------- #

def _linear_kernel_1k(x_ref, w_ref, b_ref, o_ref):
    # Whole reduction (F) in one tile: no accumulator scratch, no phase branches.
    o_ref[...] = (
        jnp.dot(x_ref[...], w_ref[...], preferred_element_type=jnp.float32)
        + b_ref[...]
    ).astype(o_ref.dtype)


def _linear_kernel_nk(x_ref, w_ref, b_ref, o_ref, acc_ref):
    # K-tiled reduction with a resident f32 accumulator (only used for huge F).
    k = pl.program_id(2)

    @pl.when(k == 0)
    def _():
        acc_ref[...] = jnp.zeros_like(acc_ref)

    acc_ref[...] += jnp.dot(
        x_ref[...], w_ref[...], preferred_element_type=jnp.float32
    )

    @pl.when(k == pl.num_programs(2) - 1)
    def _():
        # Bias added exactly once, in the finalize branch.
        o_ref[...] = (acc_ref[...] + b_ref[...]).astype(o_ref.dtype)


# --------------------------- parameter preparation ------------------------- #

def prepare_classifier_params(
    weight,
    bias,
    *,
    compute_dtype=jnp.bfloat16,
    tn_target=256,
    tk_target=2048,
    force_pallas=False,
    small_problem_bytes=1 << 20,
):
    """One-time prep: transpose, pad to tile multiples, cast weight to compute dtype.

    weight: (C, F)  -- PyTorch nn.Linear layout
    bias:   (C,)
    """
    C, F = weight.shape
    w_t = weight.T  # (F, C)

    weight_bytes = F * C * jnp.dtype(compute_dtype).itemsize
    use_pallas = force_pallas or weight_bytes >= small_problem_bytes

    if not use_pallas:
        # Tiny head: fused XLA matmul beats any pallas_call (padding waste +
        # fixed per-grid-step overhead). Keep original dtype for exactness.
        return dict(use_pallas=False, F=F, C=C, w_t=w_t, b=bias.reshape(1, C))

    # Lane-dense N tile (multiple of 128), K tile (multiple of 128).
    tn = tn_target if C >= tn_target else _round_up(C, 128)
    Cp = _round_up(C, tn)
    if F <= tk_target:
        tk = _round_up(F, 128)   # single K tile -> 2-D grid, no accumulator
        Fp = tk
    else:
        tk = tk_target
        Fp = _round_up(F, tk)

    wp = jnp.pad(w_t, ((0, Fp - F), (0, Cp - C))).astype(compute_dtype)
    bp = jnp.pad(bias.reshape(1, C), ((0, 0), (0, Cp - C))).astype(jnp.float32)

    return dict(
        use_pallas=True,
        F=F, C=C, Fp=Fp, Cp=Cp, tn=tn, tk=tk,
        compute_dtype=jnp.dtype(compute_dtype),
        w_t=wp, b=bp,
    )


# --------------------------------- forward --------------------------------- #

def classifier_forward(x, params, *, tm_target=256):
    """y = x @ weight.T + bias, using pre-prepared params.  x: (B, F)."""
    B, F = x.shape
    assert F == params["F"], (F, params["F"])
    out_dtype = x.dtype

    if not params["use_pallas"]:
        y = jnp.dot(x, params["w_t"], preferred_element_type=jnp.float32) + params["b"]
        return y.astype(out_dtype)

    compute_dtype = params["compute_dtype"]
    C = params["C"]
    Fp, Cp, tn, tk = params["Fp"], params["Cp"], params["tn"], params["tk"]
    wp, bp = params["w_t"], params["b"]

    align = _sublane_align(compute_dtype)
    tm = _choose_m_tile(B, tm_target, align)
    Bp = _round_up(B, tm)

    # Only x (the small operand) is padded / cast per call.
    xp = x.astype(compute_dtype)
    if Bp != B or Fp != F:
        xp = jnp.pad(xp, ((0, Bp - B), (0, Fp - F)))

    n_blocks = Cp // tn
    m_blocks = Bp // tm
    k_blocks = Fp // tk

    # Explicit VMEM budget: 2x double-buffered inputs + outputs (+ f32 acc).
    in_bytes = jnp.dtype(compute_dtype).itemsize
    out_bytes = jnp.dtype(out_dtype).itemsize
    vmem_needed = (
        2 * tm * tk * in_bytes
        + 2 * tk * tn * in_bytes
        + 2 * tn * 4
        + 2 * tm * tn * out_bytes
        + (tm * tn * 4 if k_blocks > 1 else 0)
    )
    vmem_limit = min(100 << 20, max(vmem_needed + (8 << 20), 32 << 20))

    if k_blocks == 1:
        # Grid (N outer, M inner): weight panel index depends only on the outer
        # axis, so each (Fp, tn) weight tile is fetched from HBM exactly once.
        out = pl.pallas_call(
            _linear_kernel_1k,
            out_shape=jax.ShapeDtypeStruct((Bp, Cp), out_dtype),
            grid_spec=pltpu.PrefetchScalarGridSpec(
                num_scalar_prefetch=0,
                grid=(n_blocks, m_blocks),
                in_specs=[
                    pl.BlockSpec((tm, tk), lambda j, i: (i, 0)),
                    pl.BlockSpec((tk, tn), lambda j, i: (0, j)),
                    pl.BlockSpec((1, tn), lambda j, i: (0, j)),
                ],
                out_specs=pl.BlockSpec((tm, tn), lambda j, i: (i, j)),
            ),
            compiler_params=pltpu.CompilerParams(
                dimension_semantics=("parallel", "parallel"),
                vmem_limit_bytes=vmem_limit,
            ),
        )(xp, wp, bp)
    else:
        out = pl.pallas_call(
            _linear_kernel_nk,
            out_shape=jax.ShapeDtypeStruct((Bp, Cp), out_dtype),
            grid_spec=pltpu.PrefetchScalarGridSpec(
                num_scalar_prefetch=0,
                grid=(n_blocks, m_blocks, k_blocks),
                in_specs=[
                    pl.BlockSpec((tm, tk), lambda j, i, k: (i, k)),
                    pl.BlockSpec((tk, tn), lambda j, i, k: (k, j)),
                    pl.BlockSpec((1, tn), lambda j, i, k: (0, j)),
                ],
                out_specs=pl.BlockSpec((tm, tn), lambda j, i, k: (i, j)),
                scratch_shapes=[pltpu.VMEM((tm, tn), jnp.float32)],
            ),
            compiler_params=pltpu.CompilerParams(
                dimension_semantics=("parallel", "parallel", "arbitrary"),
                vmem_limit_bytes=vmem_limit,
            ),
        )(xp, wp, bp)

    if Bp != B or Cp != C:
        out = out[:B, :C]
    return out


# ----------------------------------- demo ----------------------------------- #

if __name__ == "__main__":
    # Shapes consistent with the module: Linear(num_features_in=32 -> num_classes=10)
    batch = 2
    num_features_in = 32
    num_classes = 10

    key = jax.random.PRNGKey(0)
    kx, kw, kb = jax.random.split(key, 3)

    bound = 1.0 / (num_features_in ** 0.5)
    weight = jax.random.uniform(
        kw, (num_classes, num_features_in), jnp.float32, minval=-bound, maxval=bound
    )
    bias = jax.random.uniform(
        kb, (num_classes,), jnp.float32, minval=-bound, maxval=bound
    )
    x = jax.random.normal(kx, (batch, num_features_in), jnp.float32)

    y_ref = x @ weight.T + bias  # PyTorch Linear semantics

    # 1) Pallas path with f32 compute (exact) -- force the kernel so the TPU
    #    path is exercised even at this tiny demo shape.
    params_f32 = prepare_classifier_params(
        weight, bias, compute_dtype=jnp.float32, force_pallas=True
    )
    y_f32 = jax.block_until_ready(classifier_forward(x, params_f32))
    assert y_f32.shape == (batch, num_classes)
    assert jnp.allclose(y_f32, y_ref, atol=1e-5, rtol=1e-5)

    # 2) Pallas path with bf16 weight/activation streaming (f32 accumulation) --
    #    the production configuration for large heads; bf16 input tolerance.
    params_bf16 = prepare_classifier_params(
        weight, bias, compute_dtype=jnp.bfloat16, force_pallas=True
    )
    y_bf16 = jax.block_until_ready(classifier_forward(x, params_bf16))
    assert y_bf16.shape == (batch, num_classes)
    assert jnp.allclose(y_bf16, y_ref, atol=3e-2, rtol=3e-2)

    # 3) Default behavior for this tiny shape: small-problem fast path (fused XLA).
    params_auto = prepare_classifier_params(weight, bias)
    y_fast = jax.block_until_ready(classifier_forward(x, params_auto))
    assert jnp.allclose(y_fast, y_ref, atol=1e-5, rtol=1e-5)

    print("KERNEL_OK")
</pallas_src>

<mosaic_0001>
module attributes {stable_mosaic.version = 11 : i64} {
  func.func @_linear_kernel_1k(%arg0: i32, %arg1: i32, %arg2: memref<8x128xf32, #tpu.memory_space<vmem>>, %arg3: memref<128x128xf32, #tpu.memory_space<vmem>>, %arg4: memref<1x128xf32, #tpu.memory_space<vmem>>, %arg5: memref<8x128xf32, #tpu.memory_space<vmem>>) attributes {dimension_semantics = [#tpu.dimension_semantics<parallel>, #tpu.dimension_semantics<parallel>], iteration_bounds = array<i64: 1, 1>, scalar_prefetch = 0 : i64, scratch_operands = 0 : i64, tpu.core_type = #tpu.core_type<tc>, window_params = [{transform_indices = @transform_0, window_bounds = array<i64: 8, 128>}, {transform_indices = @transform_1, window_bounds = array<i64: 128, 128>}, {transform_indices = @transform_2, window_bounds = array<i64: 1, 128>}, {transform_indices = @transform_3, window_bounds = array<i64: 8, 128>}]} {
    %c0 = arith.constant 0 : index
    %c0_0 = arith.constant 0 : index
    %0 = vector.load %arg2[%c0, %c0_0] : memref<8x128xf32, #tpu.memory_space<vmem>>, vector<8x128xf32>
    %c0_1 = arith.constant 0 : index
    %c0_2 = arith.constant 0 : index
    %1 = vector.load %arg3[%c0_1, %c0_2] : memref<128x128xf32, #tpu.memory_space<vmem>>, vector<128x128xf32>
    %cst = arith.constant dense<0.000000e+00> : vector<8x128xf32>
    %2 = tpu.matmul %0, %1, %cst {dimension_numbers = #tpu.dot_dimension_numbers<[1], [0], [0], [1], [0, 0, 1, 1], [], []>} : vector<8x128xf32>, vector<128x128xf32>, vector<8x128xf32> -> vector<8x128xf32>
    %c0_3 = arith.constant 0 : index
    %c0_4 = arith.constant 0 : index
    %3 = vector.load %arg4[%c0_3, %c0_4] : memref<1x128xf32, #tpu.memory_space<vmem>>, vector<1x128xf32>
    %4 = vector.broadcast %3 : vector<1x128xf32> to vector<8x128xf32>
    %5 = arith.addf %2, %4 : vector<8x128xf32>
    %c0_5 = arith.constant 0 : index
    %c0_6 = arith.constant 0 : index
    %6 = vector.load %arg5[%c0_5, %c0_6] : memref<8x128xf32, #tpu.memory_space<vmem>>, vector<8x128xf32>
    tpu.vector_store %arg5[%c0_5, %c0_6], %5 {strides = array<i32>} : memref<8x128xf32, #tpu.memory_space<vmem>>, vector<8x128xf32>,
    return
  }
  func.func @transform_0(%arg0: i32, %arg1: i32) -> (i32, i32) {
    %c0_i32 = arith.constant 0 : i32
    %c0_i32_0 = arith.constant 0 : i32
    return %arg1, %c0_i32 : i32, i32
  }
  func.func @transform_1(%arg0: i32, %arg1: i32) -> (i32, i32) {
    %c0_i32 = arith.constant 0 : i32
    %c0_i32_0 = arith.constant 0 : i32
    return %c0_i32, %arg0 : i32, i32
  }
  func.func @transform_2(%arg0: i32, %arg1: i32) -> (i32, i32) {
    %c0_i32 = arith.constant 0 : i32
    %c0_i32_0 = arith.constant 0 : i32
    return %c0_i32, %arg0 : i32, i32
  }
  func.func @transform_3(%arg0: i32, %arg1: i32) -> (i32, i32) {
    %c0_i32 = arith.constant 0 : i32
    return %arg1, %arg0 : i32, i32
  }
}

</mosaic_0001>

<bundles_post_ra>
// kernel: tpu_custom_call.1
= control target key start
LH: loop header
LB: loop body
LE: loop exit
PB: predicated region body
PF: predicated region fallthrough
CT: control target
= control target key end

     0   :  { %8 = vsyncpa [#allocation3], 0  ;;  %s383_s0 = inlined_call_operand.hbm [shape: f32[8,128], index: 0, kind: input, shape index: {}]   ;;  %s384_s1 = inlined_call_operand.hbm [shape: f32[128,128], index: 1, kind: input, shape index: {}]   ;;  %s385_s2 = inlined_call_operand.vmem [shape: f32[1,128], index: 2, kind: input, shape index: {}]   ;;  %s386_s3 = inlined_call_operand.hbm [shape: f32[8,128], index: 3, kind: output, shape index: {}]  }
   0x1   :  { %9 = vsyncpa [#allocation6], 0 }
   0x2   :  { %10 = vsyncpa [#allocation4], 0  ;;  %s309_s12 = smov [#allocation2]   ;;  %s310_s14 = smov [#allocation5]  }
   0x3   :  { %s17_s13 = sshll.u32 %s309_s12, 4  ;;  %s26_s15 = sshll.u32 %s310_s14, 4  ;;  %s18_s13 = int_to_ptr.vmem [resolvable:$true] %s17_s13  ;;  %s337_s15 = int_to_ptr.vmem [resolvable:$true] %s26_s15 }
   0x4   :  { %s237_s18 = scalar_lea.hbm %s383_s0, 128 }
   0x5   :  { %p238_p0 = scmp.ne.s32.totalorder %s383_s0, %s237_s18  ;;  %p241_p1 = scmp.lt.u32.totalorder %s237_s18, %s383_s0 }
   0x7   :  { %p243_p2 = pnand %p241_p1, %p238_p0 }
   0x9   :  { %246 = shalt.err (!%p243_p2)
}
   0xa   :  { %s247_s23 = scalar_lea.vmem %s18_s13, 128  ;;  %p252_p4 = scmp.lt.s32.totalorder %s18_s13, %s18_s13 }
   0xb   :  { %p248_p3 = scmp.ne.s32.totalorder %s18_s13, %s247_s23  ;;  %p253_p5 = scmp.lt.s32.totalorder %s247_s23, %s247_s23 }
   0xd   :  { %p254_p6 = por %p253_p5, %p252_p4 }
   0xf   :  { %p255_p7 = pnand %p254_p6, %p248_p3 }
  0x11   :  { %258 = shalt.err (!%p255_p7)
}
  0x12   :  { %20 = dma.hbm_to_vmem [thread:$0]  %s383_s0, 128, %s18_s13, [#allocation3]  }
  0x13   :  { %s259_s28 = scalar_lea.hbm %s384_s1, 2048 }
  0x14   :  { %p260_p8 = scmp.ne.s32.totalorder %s384_s1, %s259_s28  ;;  %p263_p9 = scmp.lt.u32.totalorder %s259_s28, %s384_s1 }
  0x16   :  { %p265_p10 = pnand %p263_p9, %p260_p8 }
  0x18   :  { %268 = shalt.err (!%p265_p10)
}
  0x19   :  { %s269_s6 = scalar_lea.vmem %s337_s15, 2048  ;;  %p274_p12 = scmp.lt.s32.totalorder %s337_s15, %s337_s15 }
  0x1a   :  { %p270_p11 = scmp.ne.s32.totalorder %s337_s15, %s269_s6  ;;  %p275_p13 = scmp.lt.s32.totalorder %s269_s6, %s269_s6 }
  0x1c   :  { %p276_p0 = por %p275_p13, %p274_p12 }
  0x1e   :  { %p277_p1 = pnand %p276_p0, %p270_p11 }
  0x20   :  { %280 = shalt.err (!%p277_p1)
}
  0x21   :  { %s311_s0 = smov 128   ;;  %s312_s7 = smov 8  }
  0x22   :  { %32 = dma.hbm_to_vmem [thread:$0]  %s384_s1, 2048, %s337_s15, [#allocation6], %s311_s0, %s311_s0, %s312_s7  }
  0x23   :  { %303 = dma.done.wait [#allocation3], 128  }
  0x24   :  { %304 = vsyncadd [#allocation3], 4294967168 }
  0x25   :  { %305 = dma.done.wait [#allocation6], 2048  }
  0x26   :  { %306 = vsyncadd [#allocation6], 4294965248  ;;  %v313_v0 = vmov 0.0|0.0   ;;  %vm314_vm0 = vmmov 0   ;;  %v315_v1 = vmov 0.0   ;;  %v42_v2 = vld [vmem:[#allocation5] sm:$0xff] }
  0x27   :  { %205 = vmatprep.subr.bf16.mxu0 %v313_v0  ;;  %202 = vmatprep.mubr.msk.f32.mxu0 %vm314_vm0, %v315_v1  ;;  %v43_v3 = vld [vmem:[#allocation5 + $0x8] sm:$0xff]  ;;  %v44_v4 = vld [vmem:[#allocation5 + $0x10] sm:$0xff]  ;;  %v45_v6 = vld [vmem:[#allocation5 + $0x18] sm:$0xff]  ;;  %s316_s11 = smov [#allocation7]  }
  0x28   :  { %v206_v5 = vpack.c.bf16 %v43_v3, %v42_v2  ;;  %v209_v7 = vpack.c.bf16 %v45_v6, %v44_v4  ;;  %v46_v8 = vld [vmem:[#allocation5 + $0x20] sm:$0xff]  ;;  %v47_v9 = vld [vmem:[#allocation5 + $0x28] sm:$0xff]  ;;  %v48_v11 = vld [vmem:[#allocation5 + $0x30] sm:$0xff]  ;;  %s142_s12 = sshll.u32 %s316_s11, 4  ;;  %s143_s12 = int_to_ptr.vmem [resolvable:$true] %s142_s12 }
  0x29   :  { %v212_v10 = vpack.c.bf16 %v47_v9, %v46_v8  ;;  %v49_v12 = vld [vmem:[#allocation5 + $0x38] sm:$0xff]  ;;  %v50_v14 = vld [vmem:[#allocation5 + $0x40] sm:$0xff]  ;;  %v51_v15 = vld [vmem:[#allocation5 + $0x48] sm:$0xff]  ;;  %s281_s13 = scalar_lea.vmem %s143_s12, 128  ;;  %p286_p3 = scmp.lt.s32.totalorder %s143_s12, %s143_s12 }
  0x2a   :  { %207 = vmatpush3.bf16.msra.mxu0 %v206_v5  ;;  %v215_v13 = vpack.c.bf16 %v49_v12, %v48_v11  ;;  %v218_v16 = vpack.c.bf16 %v51_v15, %v50_v14  ;;  %v52_v17 = vld [vmem:[#allocation5 + $0x50] sm:$0xff]  ;;  %v53_v18 = vld [vmem:[#allocation5 + $0x58] sm:$0xff]  ;;  %v54_v20 = vld [vmem:[#allocation5 + $0x60] sm:$0xff]  ;;  %p282_p2 = scmp.ne.s32.totalorder %s143_s12, %s281_s13  ;;  %p287_p4 = scmp.lt.s32.totalorder %s281_s13, %s281_s13 }
  0x2b   :  { %208 = vmatprep.subr.bf16.mxu0 %v313_v0  ;;  %v221_v19 = vpack.c.bf16 %v53_v18, %v52_v17  ;;  %v55_v21 = vld [vmem:[#allocation5 + $0x68] sm:$0xff]  ;;  %v56_v23 = vld [vmem:[#allocation5 + $0x70] sm:$0xff]  ;;  %v57_v24 = vld [vmem:[#allocation5 + $0x78] sm:$0xff] }
  0x2c   :  { %v224_v22 = vpack.c.bf16 %v55_v21, %v54_v20  ;;  %v227_v25 = vpack.c.bf16 %v57_v24, %v56_v23  ;;  %v41_v26 = vld [vmem:[#allocation2] sm:$0xff]  ;;  %p288_p5 = por %p287_p4, %p286_p3 }
  0x2d   :  { %v152_v27 = vld [vmem:[%s385_s2] ss:$0 sm:$0xff] }
  0x2e   :  { %210 = vmatpush3.bf16.msra.mxu0 %v209_v7  ;;  %p289_p6 = pnand %p288_p5, %p282_p2 }
  0x2f   :  { %211 = vmatprep.subr.bf16.mxu0 %v313_v0 }
  0x32   :  { %213 = vmatpush3.bf16.msra.mxu0 %v212_v10 }
  0x33   :  { %214 = vmatprep.subr.bf16.mxu0 %v313_v0 }
  0x36   :  { %216 = vmatpush3.bf16.msra.mxu0 %v215_v13 }
  0x37   :  { %217 = vmatprep.subr.bf16.mxu0 %v313_v0 }
  0x3a   :  { %219 = vmatpush3.bf16.msra.mxu0 %v218_v16 }
  0x3b   :  { %220 = vmatprep.subr.bf16.mxu0 %v313_v0 }
  0x3e   :  { %222 = vmatpush3.bf16.msra.mxu0 %v221_v19 }
  0x3f   :  { %223 = vmatprep.subr.bf16.mxu0 %v313_v0 }
  0x42   :  { %225 = vmatpush3.bf16.msra.mxu0 %v224_v22 }
  0x43   :  { %226 = vmatprep.subr.bf16.mxu0 %v313_v0 }
  0x46   :  { %228 = vmatpush3.bf16.msra.mxu0 %v227_v25 }
  0x49   :  { %203 = vmatmul.mubr.f32.vlgmr.msra.gmra.mrb[0].mxu0 %v41_v26 }
 0x11c   :  { %v131_v28 = vpop.f32.mrb[0].mxu0 }
 0x11d   :  { %v132_v29 = vadd.f32 %v152_v27, %v131_v28  ;;  %v204_v30 = vpop.f32.mrb[1].mxu0 }
 0x11f   :  { %135 = vst [vmem:[#allocation7] sm:$0xff] %v132_v29 }
 0x120   :  { %292 = shalt.err (!%p289_p6)
}
 0x121   :  { %s293_s16 = scalar_lea.hbm %s386_s3, 128 }
 0x122   :  { %p294_p7 = scmp.ne.s32.totalorder %s386_s3, %s293_s16  ;;  %p297_p8 = scmp.lt.u32.totalorder %s293_s16, %s386_s3 }
 0x124   :  { %p299_p9 = pnand %p297_p8, %p294_p7 }
 0x126   :  { %302 = shalt.err (!%p299_p9)
}
 0x127   :  { %145 = dma.vmem_to_hbm [thread:$0]  %s143_s12, 128, %s386_s3, [#allocation4]  }
 0x128   :  { %307 = dma.done.wait [#allocation4], 128  }
 0x129   :  { %308 = vsyncadd [#allocation4], 4294967168 }
 0x12a   :  { %149 = vsyncpa [#allocation3], 1 }
 0x12b   :  { %150 = vsyncpa [#allocation6], 1 }
 0x12c   :  { %151 = vsyncpa [#allocation4], 1 }

</bundles_post_ra>
